<compile_context>
chip_gen: v5e
topology: v5e:2x2
jax: 0.10.0
libtpu: 0.0.40
codegen_flags: <defaults>
</compile_context>

<pallas_src>
import functools

import jax
import jax.numpy as jnp
from jax import lax
from jax.experimental import pallas as pl
from jax.experimental.pallas import tpu as pltpu


def _round_up(x, m):
    return ((x + m - 1) // m) * m


def _fused_sage_kernel(a_hbm, x0_hbm, w_ref, b_ref, o_ref,
                       a_vmem, xs, copy_sem,
                       *, tm, num_layers, out_valid, fout_pad, f_pad):
    """One grid step = one (layer, row-tile) of the fused SAGE stack."""
    l = pl.program_id(0)                     # layer index (outer, sequential)
    t = pl.program_id(1)                     # row-tile index (inner)
    r0 = pl.multiple_of(t * tm, tm)          # first node row of this tile

    # One-time loads at the very first grid step:
    #   * A_norm -> single-buffered VMEM residency (DMA'd from HBM once),
    #   * X0     -> slot 0 of the ping-pong feature buffer.
    @pl.when(jnp.logical_and(l == 0, t == 0))
    def _():
        cp_a = pltpu.make_async_copy(a_hbm, a_vmem, copy_sem.at[0])
        cp_x = pltpu.make_async_copy(x0_hbm, xs.at[0], copy_sem.at[1])
        cp_a.start()
        cp_x.start()
        cp_a.wait()
        cp_x.wait()

    read_slot = lax.rem(l, 2)                # layer l reads slot l % 2
    x_in = xs.at[read_slot]                  # (N_pad, F_pad) bf16 ref view

    # Mean aggregation over incoming edges: dense normalized adjacency matmul,
    # bf16 inputs with f32 accumulation on the MXU.
    a_rows = a_vmem[pl.ds(r0, tm), :]                        # (tm, N_pad)
    agg = jnp.dot(a_rows, x_in[...], preferred_element_type=jnp.float32)
    x_tile = x_in[pl.ds(r0, tm), :]                          # (tm, F_pad)

    # Fused [W_l ; W_r] linear as two accumulating matmuls against static
    # halves of the weight ref (same MXU work as K = 2*F_pad, no concat).
    h = jnp.dot(agg.astype(jnp.bfloat16), w_ref[0, :f_pad, :],
                preferred_element_type=jnp.float32)
    h = h + jnp.dot(x_tile, w_ref[0, f_pad:, :],
                    preferred_element_type=jnp.float32)
    h = h + b_ref[0]

    # Hidden layers: ReLU (dropout is identity at inference; batch_norm=False),
    # write this tile's rows into the other ping-pong slot. Static slot index
    # in each branch keeps the store fully static along the leading axis.
    act = jnp.maximum(h, 0.0).astype(jnp.bfloat16)
    is_hidden = l < num_layers - 1

    @pl.when(jnp.logical_and(is_hidden, read_slot == 0))
    def _():
        xs[1, pl.ds(r0, tm), :] = act

    @pl.when(jnp.logical_and(is_hidden, read_slot == 1))
    def _():
        xs[0, pl.ds(r0, tm), :] = act

    # Last layer: masked log_softmax over the valid output columns only.
    @pl.when(l == num_layers - 1)
    def _():
        logits = h[:, :fout_pad]
        col = lax.broadcasted_iota(jnp.int32, logits.shape, 1)
        logits = jnp.where(col < out_valid, logits, -1e30)
        m = jnp.max(logits, axis=-1, keepdims=True)
        s = logits - m
        lse = jnp.log(jnp.sum(jnp.exp(s), axis=-1, keepdims=True))
        o_ref[...] = s - lse


def sage_forward(params, x, edge_index):
    """SAGE.forward: convs[:-1] -> conv+relu(+dropout); last conv -> log_softmax."""
    n, f_in = x.shape
    num_layers = len(params)
    dims = [f_in] + [w_l.shape[1] for (w_l, _, _) in params]
    out_channels = dims[-1]

    # Lane-dense / MXU-friendly padding. tm is chosen to divide N_pad exactly
    # (N_pad is a multiple of 128) so row padding stays minimal.
    f_pad = _round_up(max(dims), 128)
    fout_pad = _round_up(out_channels, 128)
    n_pad = _round_up(n, 128)
    tm = 256 if n_pad % 256 == 0 else 128
    num_tiles = n_pad // tm

    # Dense normalized adjacency for mean aggregation (bf16, f32 accumulation
    # in the kernel): A_norm[i, j] = (#edges j->i) / in_degree(i).
    src, dst = edge_index[0], edge_index[1]
    adj = jnp.zeros((n_pad, n_pad), jnp.float32).at[dst, src].add(1.0)
    deg = jnp.sum(adj, axis=1, keepdims=True)
    a_norm = (adj / jnp.maximum(deg, 1.0)).astype(jnp.bfloat16)

    # Zero-padded input features, bf16.
    x0 = jnp.zeros((n_pad, f_pad), jnp.bfloat16)
    x0 = x0.at[:n, :f_in].set(x.astype(jnp.bfloat16))

    # Pad + stack the fused [W_l ; W_r] weights and biases across layers.
    w_stack = jnp.zeros((num_layers, 2 * f_pad, f_pad), jnp.float32)
    b_stack = jnp.zeros((num_layers, 1, f_pad), jnp.float32)
    for li, (w_l, w_r, b) in enumerate(params):
        fin, fout = w_l.shape
        w_stack = w_stack.at[li, :fin, :fout].set(w_l)
        w_stack = w_stack.at[li, f_pad:f_pad + fin, :fout].set(w_r)
        b_stack = b_stack.at[li, 0, :fout].set(b.reshape(-1))
    w_stack = w_stack.astype(jnp.bfloat16)

    # Actual resident VMEM footprint (+headroom), clamped to safe bounds.
    vmem_bytes = (
        n_pad * n_pad * 2                  # resident A_norm (single-buffered)
        + 2 * n_pad * f_pad * 2            # ping-pong feature scratch
        + 2 * (2 * f_pad * f_pad * 2)      # double-buffered fused weights
        + 2 * (f_pad * 4)                  # double-buffered bias
        + 2 * (tm * fout_pad * 4)          # double-buffered output tile
    )
    vmem_limit = int(min(max(2 * vmem_bytes, 16 * 1024 * 1024),
                         64 * 1024 * 1024))

    kernel = functools.partial(
        _fused_sage_kernel, tm=tm, num_layers=num_layers,
        out_valid=out_channels, fout_pad=fout_pad, f_pad=f_pad)

    out_pad = pl.pallas_call(
        kernel,
        out_shape=jax.ShapeDtypeStruct((n_pad, fout_pad), jnp.float32),
        grid=(num_layers, num_tiles),
        in_specs=[
            # A_norm stays in HBM; DMA'd once into a single-buffered scratch.
            pl.BlockSpec(memory_space=pl.ANY),
            # X0 stays in HBM; DMA'd once into ping-pong slot 0.
            pl.BlockSpec(memory_space=pl.ANY),
            # fused [W_l ; W_r] per layer, streamed along the (outer) layer axis.
            pl.BlockSpec((1, 2 * f_pad, f_pad), lambda l, t: (l, 0, 0)),
            # bias per layer
            pl.BlockSpec((1, 1, f_pad), lambda l, t: (l, 0, 0)),
        ],
        # Lane-dense per-row-tile output; only the last layer writes real data
        # (earlier-layer writebacks are harmless and later overwritten).
        out_specs=pl.BlockSpec((tm, fout_pad), lambda l, t: (t, 0)),
        scratch_shapes=[
            pltpu.VMEM((n_pad, n_pad), jnp.bfloat16),     # resident A_norm
            pltpu.VMEM((2, n_pad, f_pad), jnp.bfloat16),  # ping-pong features
            pltpu.SemaphoreType.DMA((2,)),
        ],
        compiler_params=pltpu.CompilerParams(
            dimension_semantics=("arbitrary", "arbitrary"),
            vmem_limit_bytes=vmem_limit),
    )(a_norm, x0, w_stack, b_stack)

    return out_pad[:n, :out_channels]


def init_sage_params(key, in_channels, hidden_channels, out_channels, num_layers):
    """Deterministic glorot-uniform weights + zero bias per SAGEConv layer."""
    dims = [in_channels] + [hidden_channels] * (num_layers - 1) + [out_channels]
    params = []
    for li in range(num_layers):
        fin, fout = dims[li], dims[li + 1]
        key, k1, k2 = jax.random.split(key, 3)
        limit = (6.0 / (fin + fout)) ** 0.5
        w_l = jax.random.uniform(k1, (fin, fout), jnp.float32, -limit, limit)
        w_r = jax.random.uniform(k2, (fin, fout), jnp.float32, -limit, limit)
        b = jnp.zeros((1, fout), jnp.float32)
        params.append((w_l, w_r, b))
    return params


if __name__ == "__main__":
    # Small, deterministic problem: 128 nodes, 512 edges, 3-layer SAGE.
    N = 128
    E = 512
    IN_CHANNELS = 32
    HIDDEN_CHANNELS = 64
    OUT_CHANNELS = 16
    NUM_LAYERS = 3
    DROPOUT = 0.5  # identity at inference

    key = jax.random.PRNGKey(0)
    kx, ke_src, ke_dst, kp = jax.random.split(key, 4)

    x = jax.random.normal(kx, (N, IN_CHANNELS), dtype=jnp.float32)
    edge_index = jnp.stack([
        jax.random.randint(ke_src, (E,), 0, N, dtype=jnp.int32),
        jax.random.randint(ke_dst, (E,), 0, N, dtype=jnp.int32),
    ], axis=0)  # (2, E), row 0 = source, row 1 = target (PyG convention)

    params = init_sage_params(kp, IN_CHANNELS, HIDDEN_CHANNELS,
                              OUT_CHANNELS, NUM_LAYERS)

    out = sage_forward(params, x, edge_index)
    out = jax.block_until_ready(out)

    assert out.shape == (N, OUT_CHANNELS)
    # log_softmax rows should (approximately) sum to 1 after exp
    row_sums = jnp.sum(jnp.exp(out), axis=-1)
    assert bool(jnp.all(jnp.abs(row_sums - 1.0) < 1e-2))

    print("KERNEL_OK")
</pallas_src>

<mosaic_0001>
module attributes {stable_mosaic.version = 11 : i64} {
  func.func @_fused_sage_kernel(%arg0: i32, %arg1: i32, %arg2: memref<128x128xbf16, #tpu.memory_space<any>>, %arg3: memref<128x128xbf16, #tpu.memory_space<any>>, %arg4: memref<1x256x128xbf16, #tpu.memory_space<vmem>>, %arg5: memref<1x1x128xf32, #tpu.memory_space<vmem>>, %arg6: memref<128x128xf32, #tpu.memory_space<vmem>>, %arg7: memref<128x128xbf16, #tpu.memory_space<vmem>>, %arg8: memref<2x128x128xbf16, #tpu.memory_space<vmem>>, %arg9: memref<2x!tpu.dma_semaphore, #tpu.memory_space<semaphore_mem>>) attributes {dimension_semantics = [#tpu.dimension_semantics<arbitrary>, #tpu.dimension_semantics<arbitrary>], iteration_bounds = array<i64: 3, 1>, scalar_prefetch = 0 : i64, scratch_operands = 3 : i64, tpu.core_type = #tpu.core_type<tc>, window_params = [{}, {}, {transform_indices = @transform_2, window_bounds = array<i64: 1, 256, 128>}, {transform_indices = @transform_3, window_bounds = array<i64: 1, 1, 128>}, {transform_indices = @transform_4, window_bounds = array<i64: 128, 128>}]} {
    %c128_i32 = arith.constant 128 : i32
    %0 = arith.muli %arg1, %c128_i32 : i32
    %1 = tpu.assume_multiple %0, 128 : i32
    %c0_i32 = arith.constant 0 : i32
    %2 = arith.cmpi eq, %arg0, %c0_i32 : i32
    %c0_i32_0 = arith.constant 0 : i32
    %3 = arith.cmpi eq, %arg1, %c0_i32_0 : i32
    %4 = arith.andi %2, %3 : i1
    %5 = arith.extui %4 : i1 to i32
    %c0_i32_1 = arith.constant 0 : i32
    %6 = arith.cmpi ne, %5, %c0_i32_1 : i32
    scf.if %6 {
      %c0_i32_24 = arith.constant 0 : i32
      %45 = tpu.memref_slice %arg9[%c0_i32_24] : memref<2x!tpu.dma_semaphore, #tpu.memory_space<semaphore_mem>> -> memref<1x!tpu.dma_semaphore, #tpu.memory_space<semaphore_mem>>
      %46 = tpu.memref_squeeze %45 : memref<1x!tpu.dma_semaphore, #tpu.memory_space<semaphore_mem>> -> memref<!tpu.dma_semaphore, #tpu.memory_space<semaphore_mem>>
      tpu.enqueue_dma source(%arg2 : memref<128x128xbf16, #tpu.memory_space<any>>) target(%arg7 : memref<128x128xbf16, #tpu.memory_space<vmem>>) target_semaphore(%46 : memref<!tpu.dma_semaphore, #tpu.memory_space<semaphore_mem>>)
      %c0_i32_25 = arith.constant 0 : i32
      %c1_i32_26 = arith.constant 1 : i32
      %c0_i32_27 = arith.constant 0 : i32
      %c0_i32_28 = arith.constant 0 : i32
      %47 = tpu.memref_slice %arg8[%c0_i32_25, %c0_i32_27, %c0_i32_28] : memref<2x128x128xbf16, #tpu.memory_space<vmem>> -> memref<1x128x128xbf16, #tpu.memory_space<vmem>>
      %48 = tpu.memref_squeeze %47 : memref<1x128x128xbf16, #tpu.memory_space<vmem>> -> memref<128x128xbf16, #tpu.memory_space<vmem>>
      %49 = tpu.memref_slice %arg9[%c1_i32_26] : memref<2x!tpu.dma_semaphore, #tpu.memory_space<semaphore_mem>> -> memref<1x!tpu.dma_semaphore, #tpu.memory_space<semaphore_mem>>
      %50 = tpu.memref_squeeze %49 : memref<1x!tpu.dma_semaphore, #tpu.memory_space<semaphore_mem>> -> memref<!tpu.dma_semaphore, #tpu.memory_space<semaphore_mem>>
      tpu.enqueue_dma source(%arg3 : memref<128x128xbf16, #tpu.memory_space<any>>) target(%48 : memref<128x128xbf16, #tpu.memory_space<vmem>>) target_semaphore(%50 : memref<!tpu.dma_semaphore, #tpu.memory_space<semaphore_mem>>)
      %c0_i32_29 = arith.constant 0 : i32
      %51 = tpu.memref_slice %arg9[%c0_i32_29] : memref<2x!tpu.dma_semaphore, #tpu.memory_space<semaphore_mem>> -> memref<1x!tpu.dma_semaphore, #tpu.memory_space<semaphore_mem>>
      %52 = tpu.memref_squeeze %51 : memref<1x!tpu.dma_semaphore, #tpu.memory_space<semaphore_mem>> -> memref<!tpu.dma_semaphore, #tpu.memory_space<semaphore_mem>>
      tpu.wait_dma2 semaphore(%52 : memref<!tpu.dma_semaphore, #tpu.memory_space<semaphore_mem>>) src(%arg2 : memref<128x128xbf16, #tpu.memory_space<any>>) dst(%arg7 : memref<128x128xbf16, #tpu.memory_space<vmem>>)
      %c0_i32_30 = arith.constant 0 : i32
      %c1_i32_31 = arith.constant 1 : i32
      %c0_i32_32 = arith.constant 0 : i32
      %c0_i32_33 = arith.constant 0 : i32
      %53 = tpu.memref_slice %arg8[%c0_i32_30, %c0_i32_32, %c0_i32_33] : memref<2x128x128xbf16, #tpu.memory_space<vmem>> -> memref<1x128x128xbf16, #tpu.memory_space<vmem>>
      %54 = tpu.memref_squeeze %53 : memref<1x128x128xbf16, #tpu.memory_space<vmem>> -> memref<128x128xbf16, #tpu.memory_space<vmem>>
      %55 = tpu.memref_slice %arg9[%c1_i32_31] : memref<2x!tpu.dma_semaphore, #tpu.memory_space<semaphore_mem>> -> memref<1x!tpu.dma_semaphore, #tpu.memory_space<semaphore_mem>>
      %56 = tpu.memref_squeeze %55 : memref<1x!tpu.dma_semaphore, #tpu.memory_space<semaphore_mem>> -> memref<!tpu.dma_semaphore, #tpu.memory_space<semaphore_mem>>
      tpu.wait_dma2 semaphore(%56 : memref<!tpu.dma_semaphore, #tpu.memory_space<semaphore_mem>>) src(%arg3 : memref<128x128xbf16, #tpu.memory_space<any>>) dst(%54 : memref<128x128xbf16, #tpu.memory_space<vmem>>)
    } else {
    }
    %c2_i32 = arith.constant 2 : i32
    %7 = arith.remsi %arg0, %c2_i32 : i32
    %8 = arith.index_cast %1 : i32 to index
    %c0 = arith.constant 0 : index
    %9 = vector.load %arg7[%8, %c0] : memref<128x128xbf16, #tpu.memory_space<vmem>>, vector<128x128xbf16>
    %10 = arith.index_cast %7 : i32 to index
    %c0_2 = arith.constant 0 : index
    %c0_3 = arith.constant 0 : index
    %11 = vector.load %arg8[%10, %c0_2, %c0_3] : memref<2x128x128xbf16, #tpu.memory_space<vmem>>, vector<1x128x128xbf16>
    %12 = vector.shape_cast %11 : vector<1x128x128xbf16> to vector<128x128xbf16>
    %cst = arith.constant dense<0.000000e+00> : vector<128x128xf32>
    %13 = tpu.matmul %9, %12, %cst {dimension_numbers = #tpu.dot_dimension_numbers<[1], [0], [0], [1], [0, 0, 1, 1], [], []>} : vector<128x128xbf16>, vector<128x128xbf16>, vector<128x128xf32> -> vector<128x128xf32>
    %c0_i32_4 = arith.constant 0 : i32
    %c0_i32_5 = arith.constant 0 : i32
    %14 = tpu.memref_slice %arg8[%7, %c0_i32_4, %c0_i32_5] : memref<2x128x128xbf16, #tpu.memory_space<vmem>> -> memref<1x128x128xbf16, #tpu.memory_space<vmem>>
    %15 = tpu.memref_squeeze %14 : memref<1x128x128xbf16, #tpu.memory_space<vmem>> -> memref<128x128xbf16, #tpu.memory_space<vmem>>
    %16 = arith.index_cast %1 : i32 to index
    %c0_6 = arith.constant 0 : index
    %17 = vector.load %15[%16, %c0_6] : memref<128x128xbf16, #tpu.memory_space<vmem>>, vector<128x128xbf16>
    %18 = arith.truncf %13 : vector<128x128xf32> to vector<128x128xbf16>
    %c0_7 = arith.constant 0 : index
    %c0_8 = arith.constant 0 : index
    %c0_9 = arith.constant 0 : index
    %19 = vector.load %arg4[%c0_7, %c0_8, %c0_9] : memref<1x256x128xbf16, #tpu.memory_space<vmem>>, vector<1x128x128xbf16>
    %20 = vector.shape_cast %19 : vector<1x128x128xbf16> to vector<128x128xbf16>
    %cst_10 = arith.constant dense<0.000000e+00> : vector<128x128xf32>
    %21 = tpu.matmul %18, %20, %cst_10 {dimension_numbers = #tpu.dot_dimension_numbers<[1], [0], [0], [1], [0, 0, 1, 1], [], []>} : vector<128x128xbf16>, vector<128x128xbf16>, vector<128x128xf32> -> vector<128x128xf32>
    %c0_11 = arith.constant 0 : index
    %c128 = arith.constant 128 : index
    %c0_12 = arith.constant 0 : index
    %22 = vector.load %arg4[%c0_11, %c128, %c0_12] : memref<1x256x128xbf16, #tpu.memory_space<vmem>>, vector<1x128x128xbf16>
    %23 = vector.shape_cast %22 : vector<1x128x128xbf16> to vector<128x128xbf16>
    %cst_13 = arith.constant dense<0.000000e+00> : vector<128x128xf32>
    %24 = tpu.matmul %17, %23, %cst_13 {dimension_numbers = #tpu.dot_dimension_numbers<[1], [0], [0], [1], [0, 0, 1, 1], [], []>} : vector<128x128xbf16>, vector<128x128xbf16>, vector<128x128xf32> -> vector<128x128xf32>
    %25 = arith.addf %21, %24 : vector<128x128xf32>
    %c0_14 = arith.constant 0 : index
    %c0_15 = arith.constant 0 : index
    %c0_16 = arith.constant 0 : index
    %26 = vector.load %arg5[%c0_14, %c0_15, %c0_16] : memref<1x1x128xf32, #tpu.memory_space<vmem>>, vector<1x1x128xf32>
    %27 = vector.shape_cast %26 : vector<1x1x128xf32> to vector<1x128xf32>
    %28 = vector.broadcast %27 : vector<1x128xf32> to vector<128x128xf32>
    %29 = arith.addf %25, %28 : vector<128x128xf32>
    %cst_17 = arith.constant 0.000000e+00 : f32
    %30 = vector.broadcast %cst_17 : f32 to vector<128x128xf32>
    %31 = arith.maximumf %29, %30 : vector<128x128xf32>
    %32 = arith.truncf %31 : vector<128x128xf32> to vector<128x128xbf16>
    %c2_i32_18 = arith.constant 2 : i32
    %33 = arith.cmpi slt, %arg0, %c2_i32_18 : i32
    %c0_i32_19 = arith.constant 0 : i32
    %34 = arith.cmpi eq, %7, %c0_i32_19 : i32
    %35 = arith.andi %33, %34 : i1
    %36 = arith.extui %35 : i1 to i32
    %c0_i32_20 = arith.constant 0 : i32
    %37 = arith.cmpi ne, %36, %c0_i32_20 : i32
    scf.if %37 {
      %c1 = arith.constant 1 : index
      %45 = arith.index_cast %1 : i32 to index
      %c0_24 = arith.constant 0 : index
      %46 = vector.load %arg8[%c1, %45, %c0_24] : memref<2x128x128xbf16, #tpu.memory_space<vmem>>, vector<1x128x128xbf16>
      %47 = vector.shape_cast %46 : vector<1x128x128xbf16> to vector<128x128xbf16>
      %48 = vector.shape_cast %32 : vector<128x128xbf16> to vector<1x128x128xbf16>
      tpu.vector_store %arg8[%c1, %45, %c0_24], %48 {strides = array<i32>} : memref<2x128x128xbf16, #tpu.memory_space<vmem>>, vector<1x128x128xbf16>,
    } else {
    }
    %c1_i32 = arith.constant 1 : i32
    %38 = arith.cmpi eq, %7, %c1_i32 : i32
    %39 = arith.andi %33, %38 : i1
    %40 = arith.extui %39 : i1 to i32
    %c0_i32_21 = arith.constant 0 : i32
    %41 = arith.cmpi ne, %40, %c0_i32_21 : i32
    scf.if %41 {
      %c0_24 = arith.constant 0 : index
      %45 = arith.index_cast %1 : i32 to index
      %c0_25 = arith.constant 0 : index
      %46 = vector.load %arg8[%c0_24, %45, %c0_25] : memref<2x128x128xbf16, #tpu.memory_space<vmem>>, vector<1x128x128xbf16>
      %47 = vector.shape_cast %46 : vector<1x128x128xbf16> to vector<128x128xbf16>
      %48 = vector.shape_cast %32 : vector<128x128xbf16> to vector<1x128x128xbf16>
      tpu.vector_store %arg8[%c0_24, %45, %c0_25], %48 {strides = array<i32>} : memref<2x128x128xbf16, #tpu.memory_space<vmem>>, vector<1x128x128xbf16>,
    } else {
    }
    %c2_i32_22 = arith.constant 2 : i32
    %42 = arith.cmpi eq, %arg0, %c2_i32_22 : i32
    %43 = arith.extui %42 : i1 to i32
    %c0_i32_23 = arith.constant 0 : i32
    %44 = arith.cmpi ne, %43, %c0_i32_23 : i32
    scf.if %44 {
      %45 = tpu.iota {dimensions = array<i32: 1>} : vector<128x128xi32>
      %c16_i32 = arith.constant 16 : i32
      %46 = vector.broadcast %c16_i32 : i32 to vector<128x128xi32>
      %47 = arith.cmpi slt, %45, %46 : vector<128x128xi32>
      %cst_24 = arith.constant -1.000000e+30 : f32
      %48 = vector.broadcast %cst_24 : f32 to vector<128x128xf32>
      %49 = arith.select %47, %29, %48 : vector<128x128xi1>, vector<128x128xf32>
      %cst_25 = arith.constant dense<0xFF800000> : vector<128xf32>
      %50 = vector.multi_reduction <maximumf>, %49, %cst_25 [1] : vector<128x128xf32> to vector<128xf32>
      %51 = vector.shape_cast %50 : vector<128xf32> to vector<128x1xf32>
      %52 = vector.broadcast %51 : vector<128x1xf32> to vector<128x128xf32>
      %53 = arith.subf %49, %52 : vector<128x128xf32>
      %54 = math.exp %53 : vector<128x128xf32>
      %cst_26 = arith.constant dense<0.000000e+00> : vector<128xf32>
      %55 = vector.multi_reduction <add>, %54, %cst_26 [1] : vector<128x128xf32> to vector<128xf32>
      %56 = vector.shape_cast %55 : vector<128xf32> to vector<128x1xf32>
      %57 = math.log %56 : vector<128x1xf32>
      %58 = vector.broadcast %57 : vector<128x1xf32> to vector<128x128xf32>
      %59 = arith.subf %53, %58 : vector<128x128xf32>
      %c0_27 = arith.constant 0 : index
      %c0_28 = arith.constant 0 : index
      %60 = vector.load %arg6[%c0_27, %c0_28] : memref<128x128xf32, #tpu.memory_space<vmem>>, vector<128x128xf32>
      tpu.vector_store %arg6[%c0_27, %c0_28], %59 {strides = array<i32>} : memref<128x128xf32, #tpu.memory_space<vmem>>, vector<128x128xf32>,
    } else {
    }
    return
  }
  func.func @transform_2(%arg0: i32, %arg1: i32) -> (i32, i32, i32) {
    %c0_i32 = arith.constant 0 : i32
    %c0_i32_0 = arith.constant 0 : i32
    %c0_i32_1 = arith.constant 0 : i32
    return %arg0, %c0_i32, %c0_i32_0 : i32, i32, i32
  }
  func.func @transform_3(%arg0: i32, %arg1: i32) -> (i32, i32, i32) {
    %c0_i32 = arith.constant 0 : i32
    %c0_i32_0 = arith.constant 0 : i32
    %c0_i32_1 = arith.constant 0 : i32
    return %arg0, %c0_i32, %c0_i32_0 : i32, i32, i32
  }
  func.func @transform_4(%arg0: i32, %arg1: i32) -> (i32, i32) {
    %c0_i32 = arith.constant 0 : i32
    %c0_i32_0 = arith.constant 0 : i32
    return %arg1, %c0_i32 : i32, i32
  }
}

</mosaic_0001>

<bundles_post_ra>
// kernel: tpu_custom_call.1
= control target key start
LH: loop header
LB: loop body
LE: loop exit
PB: predicated region body
PF: predicated region fallthrough
CT: control target
= control target key end

     0   :  { %9 = vsyncpa [#allocation6], 0  ;;  %s2300_s0 = inlined_call_operand.hbm [shape: bf16[128,128], index: 0, kind: input, shape index: {}]   ;;  %s2301_s1 = inlined_call_operand.hbm [shape: bf16[128,128], index: 1, kind: input, shape index: {}]   ;;  %s2302_s2 = inlined_call_operand.hbm [shape: bf16[3,256,128], index: 2, kind: input, shape index: {}]   ;;  %s2303_s3 = inlined_call_operand.hbm [shape: f32[3,1,128], index: 3, kind: input, shape index: {}]   ;;  %s2304_s4 = inlined_call_operand.hbm [shape: f32[128,128], index: 4, kind: output, shape index: {}]  }
   0x1   :  { %11 = vsyncpa [#allocation6 + $0x1], 0 }
   0x2   :  { %12 = vsyncpa [#allocation9], 0 }
   0x3   :  { %14 = vsyncpa [#allocation9 + $0x1], 0 }
   0x4   :  { %15 = vsyncpa [#allocation7], 0  ;;  %s1897_s15 = smov 0   ;;  %s1899_s16 = smov 0  }
   0x5   :  { %s1901_s17 = smov 0   ;;  %s1903_s18 = smov 0  }
   0x6   :  { %s1905_s19 = smov 0   ;;  %s1907_s20 = smov 0  }
   0x7 LB: > { %s1154_s21 = sadd.s32 4294967295, %s1863_s20   ;;  %s33_s22 = sadd.s32 1, %s1859_s19  ;;  %s1863_s20 = sphi %s1907_s20, %s21_s20   ;;  %s1859_s19 = sphi %s1905_s19, %s2313_s19   ;;  %s1855_s18 = sphi %s1903_s18, %s2312_s18   ;;  %s1851_s17 = sphi %s1901_s17, %s2311_s17   ;;  %s1847_s16 = sphi %s1899_s16, %s2310_s16   ;;  %s1843_s15 = sphi %s1897_s15, %s2309_s15  }
   0x8   : > { %p35_p0 = scmp.ge.s32.totalorder %s33_s22, 3  ;;  %s40_s23 = sadd.s32 1, %s1851_s17 }
   0x9   : > { %p47_p1 = scmp.ne.s32.totalorder %s1851_s17, %s1847_s16  ;;  %p48_p2 = scmp.eq.s32.totalorder %s1863_s20, 0 }
   0xa   : > { %s2315_s22 = smov (%p35_p0, %s33_s22), 0  ;;  %p53_p4 = scmp.ne.s32.totalorder %s1847_s16, %s1843_s15 }
   0xb   : > { %p1933_p3 = por %p48_p2, %p47_p1  ;;  %s37_s25 = ssub.s32 %s1859_s19, %s2315_s22 }
   0xc   : > { %p54_p5 = scmp.eq.s32.totalorder %s1154_s21, 0  ;;  %p38_p6 = scmp.eq.s32.totalorder %s37_s25, 0 }
   0xd   : > { %p1530_p8 = scmp.lt.s32.totalorder %s1863_s20, 3  ;;  %s129_s28 = sand.u32 1, %s1851_s17  }
   0xe   : > { %p1942_p7 = por %p54_p5, %p53_p4  ;;  %s1349_s29 = sshll.u32 %s1859_s19, 7 }
   0xf   : > { %s1948_s27 = scalar_select %p38_p6, %s1851_s17, %s40_s23  }
  0x10   : > { %s1157_s30 = sshll.u32 %s129_s28, 7  ;;  %s138_s7 = scalar_lea.hbm %s2302_s2, %s1349_s29 }
  0x11   : > { %s139_s8 = sshll.u32 %s138_s7, 4  ;;  %s133_s9 = scalar_lea.vmem [#allocation5], %s1157_s30  ;;  %s140_s8 = int_to_ptr.hbm [resolvable:$true] %s139_s8 }
  0x12   : > { %s141_s10 = sshll.u32 %s133_s9, 4  ;;  %p1957_p9 = pnand %p1530_p8, %p1933_p3  ;;  %s142_s10 = int_to_ptr.vmem [resolvable:$true] %s141_s10 }
  0x13   : > { %p1160_p10 = scmp.ge.s32.totalorder %s1863_s20, 1  ;;  %p166_p11 = scmp.lt.s32.totalorder %s1863_s20, 4 }
  0x14   : > { %s130_s12 = scalar_lea.sflag [#allocation6], %s129_s28  ;;  %s1865_s13 = smov 64  }
  0x15   : > { %s1866_s14 = smov 4   ;;  %p167_p12 = pnand %p1160_p10, %p166_p11 }
  0x16   : > { %1526 = dma.hbm_to_vmem [thread:$0]  (!%p1957_p9), %s140_s8, 2048, %s142_s10, %s130_s12, %s1865_s13, %s1865_s13, %s1866_s14  }
  0x17   : > { %s157_s25 = scalar_lea.hbm %s2303_s3, %s1859_s19  ;;  %s154_s24 = scalar_lea.vmem [#allocation8], %s129_s28 }
  0x18   : > { %s159_s29 = sshll.u32 %s157_s25, 4  ;;  %s161_s30 = sshll.u32 %s154_s24, 4  ;;  %s160_s29 = int_to_ptr.hbm [resolvable:$true] %s159_s29  ;;  %s162_s30 = int_to_ptr.vmem [resolvable:$true] %s161_s30 }
  0x19   : > { %s152_s5 = scalar_lea.sflag [#allocation9], %s129_s28  ;;  %170 = sbr.rel (%p167_p12) target bundleno = 788 (0x314), region = 28 }
  0x1a   : > { %1529 = dma.hbm_to_vmem [thread:$0]  (!%p1957_p9), %s160_s29, 16, %s162_s30, %s152_s5  }
  0x1b   : > { %s1972_s6 = sand.u32 (!%p167_p12), 1, %s1847_s16  }
  0x1c   : > { %s1161_s7 = sshll.u32 (!%p167_p12), %s1972_s6, 7  ;;  %s173_s8 = scalar_lea.sflag (!%p167_p12), [#allocation6], %s1972_s6 }
  0x1d   : > { %s1976_s9 = scalar_lea.vmem (!%p167_p12), [#allocation5], %s1161_s7 }
  0x1e   : > { %1822 = dma.done.wait (%p1942_p7), %s173_s8, 2048  }
  0x1f   : > { %1824 = vsyncadd (%p1942_p7), %s173_s8, 4294965248  ;;  %s183_s28 = scalar_lea.sflag [#allocation9], %s1972_s6  ;;  %s185_s10 = scalar_lea.vmem [#allocation8], %s1972_s6 }
  0x20   : > { %1826 = dma.done.wait (%p1942_p7), %s183_s28, 16  }
  0x21   : > { %1828 = vsyncadd (%p1942_p7), %s183_s28, 4294967280  ;;  %p208_p13 = scmp.eq.s32.totalorder %s1855_s18, 0  ;;  %s221_s13 = sshll.u32 %s2300_s0, 4  ;;  %s222_s13 = int_to_ptr.hbm [resolvable:$true] %s221_s13 }
  0x22   : > { %s1867_s14 = smov [#allocation2]   ;;  %s235_s29 = sshll.u32 %s2301_s1, 4  ;;  %s236_s29 = int_to_ptr.hbm [resolvable:$true] %s235_s29 }
  0x23   : > { %s223_s15 = sshll.u32 %s1867_s14, 4  ;;  %s1868_s26 = smov [#allocation3]   ;;  %s224_s15 = int_to_ptr.vmem [resolvable:$true] %s223_s15 }
  0x24   : > { %1515 = dma.hbm_to_vmem [thread:$0]  (%p208_p13), %s222_s13, 1024, %s224_s15, [#allocation4] }
  0x25   : > { %s237_s24 = sshll.u32 %s1868_s26, 4  ;;  %s238_s24 = int_to_ptr.vmem [resolvable:$true] %s237_s24 }
  0x26   : > { %1516 = dma.hbm_to_vmem [thread:$0]  (%p208_p13), %s236_s29, 1024, %s238_s24, [#allocation4 + $0x1] }
  0x27   : > { %1830 = dma.done.wait (%p208_p13), [#allocation4], 1024 }
  0x28   : > { %1832 = vsyncadd (%p208_p13), [#allocation4], 4294966272 }
  0x29   : > { %1834 = dma.done.wait (%p208_p13), [#allocation4 + $0x1], 1024 }
  0x2a   : > { %1836 = vsyncadd (%p208_p13), [#allocation4 + $0x1], 4294966272  ;;  %p247_p0 = scmp.lt.s32.totalorder %s1855_s18, 0  ;;  %s248_s30 = ssub.s32 0, %s1855_s18  ;;  %v1351_v8 = vld [vmem:[#allocation2] sm:$0xff]  ;;  %v1357_v9 = vld [vmem:[#allocation2 + $0x30] sm:$0xff] }
  0x2b   : > { %s1163_s5 = smin.u32 %s1855_s18, %s248_s30  ;;  %p789_p1 = scmp.lt.s32.totalorder %s1855_s18, 2  ;;  %v1352_v10 = vld [vmem:[#allocation2 + $0x8] sm:$0xff]  ;;  %v1358_v11 = vld [vmem:[#allocation2 + $0x38] sm:$0xff]  ;;  %v1353_v12 = vld [vmem:[#allocation2 + $0x10] sm:$0xff] }
  0x2c   : > { %s250_s7 = sand.u32 1, %s1163_s5   ;;  %v1354_v13 = vld [vmem:[#allocation2 + $0x18] sm:$0xff]  ;;  %v1390_v16 = vld [vmem:[%s1976_s9 + $0x70] sm:$0xff]  ;;  %v1389_v18 = vld [vmem:[%s1976_s9 + $0x68] sm:$0xff] }
  0x2d   : > { %s251_s8 = ssub.s32 0, %s250_s7  ;;  %v1391_v14 = vld [vmem:[%s1976_s9 + $0x78] sm:$0xff]  ;;  %v1382_v17 = vld [vmem:[%s1976_s9 + $0x30] sm:$0xff]  ;;  %v1381_v19 = vld [vmem:[%s1976_s9 + $0x28] sm:$0xff] }
  0x2e   : > { %s2317_s8 = smov (!%p247_p0, %s251_s8), %s250_s7  ;;  %v1383_v15 = vld [vmem:[%s1976_s9 + $0x38] sm:$0xff]  ;;  %591 = vmatpush.bf16.msra.mxu1 %v1391_v14  ;;  %v1388_v20 = vld [vmem:[%s1976_s9 + $0x60] sm:$0xff]  ;;  %v1386_v25 = vld [vmem:[%s1976_s9 + $0x50] sm:$0xff] }
  0x2f   : > { %s1359_s28 = sshll.u32 %s2317_s8, 6  ;;  %p790_p2 = scmp.eq.s32.totalorder %s2317_s8, 0  ;;  %688 = vmatpush.bf16.msra.mxu2 %v1383_v15  ;;  %v1380_v21 = vld [vmem:[%s1976_s9 + $0x20] sm:$0xff]  ;;  %v1387_v23 = vld [vmem:[%s1976_s9 + $0x58] sm:$0xff]  ;;  %v1385_v26 = vld [vmem:[%s1976_s9 + $0x48] sm:$0xff] }
  0x30   : > { %s2015_s11 = scalar_lea.vmem [#allocation3], %s1359_s28  ;;  %v1355_v22 = vld [vmem:[#allocation2 + $0x20] sm:$0xff]  ;;  %v1379_v24 = vld [vmem:[%s1976_s9 + $0x18] sm:$0xff]  ;;  %v1356_v27 = vld [vmem:[#allocation2 + $0x28] sm:$0xff] }
  0x31   : > { %v1367_v0 = vld [vmem:[%s2015_s11 + $0x38] sm:$0xff]  ;;  %p2020_p3 = pnand %p790_p2, %p789_p1  ;;  %v1366_v1 = vld [vmem:[%s2015_s11 + $0x30] sm:$0xff]  ;;  %v1365_v2 = vld [vmem:[%s2015_s11 + $0x28] sm:$0xff] }
  0x32   : > { %388 = vmatpush.bf16.msra.mxu0 %v1367_v0  ;;  %1487 = vmatpush.bf16.msra.mxu3 %v1367_v0  ;;  %v1364_v3 = vld [vmem:[%s2015_s11 + $0x20] sm:$0xff]  ;;  %v1363_v4 = vld [vmem:[%s2015_s11 + $0x18] sm:$0xff]  ;;  %v1362_v5 = vld [vmem:[%s2015_s11 + $0x10] sm:$0xff] }
  0x33   : > { %v1361_v6 = vld [vmem:[%s2015_s11 + $0x8] sm:$0xff]  ;;  %v1360_v7 = vld [vmem:[%s2015_s11] sm:$0xff]  ;;  %592 = vmatpush.bf16.msra.mxu1 %v1390_v16  ;;  %689 = vmatpush.bf16.msra.mxu2 %v1382_v17  ;;  %v1378_v29 = vld [vmem:[%s1976_s9 + $0x10] sm:$0xff] }
  0x34   : > { %v1384_v28 = vld [vmem:[%s1976_s9 + $0x40] sm:$0xff]  ;;  %v1374_v30 = vld [vmem:[%s2015_s11 + $0x30] sm:$0xff]  ;;  %v1377_v31 = vld [vmem:[%s1976_s9 + $0x8] sm:$0xff] }
  0x35   : > { %v1376_v32 = vld [vmem:[%s1976_s9] sm:$0xff]  ;;  %v1375_v34 = vld [vmem:[%s2015_s11 + $0x38] sm:$0xff]  ;;  %v1369_v35 = vld [vmem:[%s2015_s11 + $0x8] sm:$0xff] }
  0x36   : > { %389 = vmatpush.bf16.msra.mxu0 %v1366_v1  ;;  %1488 = vmatpush.bf16.msra.mxu3 %v1366_v1  ;;  %v1368_v33 = vld [vmem:[%s2015_s11] sm:$0xff]  ;;  %v1370_v38 = vld [vmem:[%s2015_s11 + $0x10] sm:$0xff]  ;;  %v1371_v45 = vld [vmem:[%s2015_s11 + $0x18] sm:$0xff] }
  0x37   : > { %593 = vmatpush.bf16.msra.mxu1 %v1389_v18  ;;  %690 = vmatpush.bf16.msra.mxu2 %v1381_v19  ;;  %v1372_v51 = vld [vmem:[%s2015_s11 + $0x20] sm:$0xff]  ;;  %v1373_v55 = vld [vmem:[%s2015_s11 + $0x28] sm:$0xff] }
  0x3a   : > { %390 = vmatpush.bf16.msra.mxu0 %v1365_v2  ;;  %1489 = vmatpush.bf16.msra.mxu3 %v1365_v2 }
  0x3b   : > { %594 = vmatpush.bf16.msra.mxu1 %v1388_v20  ;;  %691 = vmatpush.bf16.msra.mxu2 %v1380_v21 }
  0x3e   : > { %391 = vmatpush.bf16.msra.mxu0 %v1364_v3  ;;  %1490 = vmatpush.bf16.msra.mxu3 %v1364_v3 }
  0x3f   : > { %595 = vmatpush.bf16.msra.mxu1 %v1387_v23  ;;  %692 = vmatpush.bf16.msra.mxu2 %v1379_v24 }
  0x42   : > { %392 = vmatpush.bf16.msra.mxu0 %v1363_v4  ;;  %1491 = vmatpush.bf16.msra.mxu3 %v1363_v4 }
  0x43   : > { %596 = vmatpush.bf16.msra.mxu1 %v1386_v25  ;;  %693 = vmatpush.bf16.msra.mxu2 %v1378_v29 }
  0x46   : > { %393 = vmatpush.bf16.msra.mxu0 %v1362_v5  ;;  %1492 = vmatpush.bf16.msra.mxu3 %v1362_v5 }
  0x47   : > { %597 = vmatpush.bf16.msra.mxu1 %v1385_v26  ;;  %694 = vmatpush.bf16.msra.mxu2 %v1377_v31 }
  0x4a   : > { %394 = vmatpush.bf16.msra.mxu0 %v1361_v6  ;;  %1493 = vmatpush.bf16.msra.mxu3 %v1361_v6 }
  0x4b   : > { %598 = vmatpush.bf16.msra.mxu1 %v1384_v28  ;;  %695 = vmatpush.bf16.msra.mxu2 %v1376_v32 }
  0x4e   : > { %395 = vmatpush.bf16.msra.mxu0 %v1360_v7  ;;  %1494 = vmatpush.bf16.msra.mxu3 %v1360_v7  ;;  %v2057_v7 = vld [vmem:[%s185_s10] ss:$0 sm:$0xff] }
  0x4f   : > { %599 = vmatmul.bf16.vlgmr.msra.gmra.mxu1 %v1368_v33 }
  0x51   : > { %396 = vmatmul.bf16.vlgmr.msra.gmra.mxu0 %v1351_v8  ;;  %426 = vmatmul.bf16.vlgmr.msra.gmra.mxu3 %v1357_v9 }
  0x52   : > { %1495 = vmatpush.bf16.msrb.mxu3 %v1391_v14 }
  0x56   : > { %1496 = vmatpush.bf16.msrb.mxu3 %v1390_v16 }
  0x5a   : > { %1497 = vmatpush.bf16.msrb.mxu3 %v1389_v18 }
  0x5e   : > { %1498 = vmatpush.bf16.msrb.mxu3 %v1388_v20 }
  0x5f   : > { %604 = vmatmul.bf16.gmra.mxu1 %v1369_v35 }
  0x61   : > { %401 = vmatmul.bf16.gmra.mxu0 %v1352_v10  ;;  %431 = vmatmul.bf16.gmra.mxu3 %v1358_v11 }
  0x62   : > { %1499 = vmatpush.bf16.msrb.mxu3 %v1387_v23 }
  0x66   : > { %1500 = vmatpush.bf16.msrb.mxu3 %v1386_v25 }
  0x6a   : > { %1501 = vmatpush.bf16.msrb.mxu3 %v1385_v26 }
  0x6e   : > { %1502 = vmatpush.bf16.msrb.mxu3 %v1384_v28 }
  0x6f   : > { %609 = vmatmul.bf16.gmra.mxu1 %v1370_v38 }
  0x71   : > { %406 = vmatmul.bf16.gmra.mxu0 %v1353_v12  ;;  %629 = vmatmul.bf16.vlgmr.msrb.gmra.mxu3 %v1374_v30 }
  0x72   : > { %1503 = vmatpush.bf16.msra.mxu3 %v1383_v15 }
  0x76   : > { %1504 = vmatpush.bf16.msra.mxu3 %v1382_v17 }
  0x7a   : > { %1505 = vmatpush.bf16.msra.mxu3 %v1381_v19 }
  0x7e   : > { %1506 = vmatpush.bf16.msra.mxu3 %v1380_v21 }
  0x7f   : > { %614 = vmatmul.bf16.gmra.mxu1 %v1371_v45 }
  0x81   : > { %411 = vmatmul.bf16.gmra.mxu0 %v1354_v13  ;;  %634 = vmatmul.bf16.gmra.mxu3 %v1375_v34 }
  0x82   : > { %1507 = vmatpush.bf16.msra.mxu3 %v1379_v24 }
  0x86   : > { %1508 = vmatpush.bf16.msra.mxu3 %v1378_v29 }
  0x8a   : > { %1509 = vmatpush.bf16.msra.mxu3 %v1377_v31 }
  0x8e   : > { %1510 = vmatpush.bf16.msra.mxu3 %v1376_v32 }
  0x8f   : > { %619 = vmatmul.bf16.gmra.mxu1 %v1372_v51 }
  0x91   : > { %416 = vmatmul.bf16.gmra.mxu0 %v1355_v22 }
  0x9f   : > { %624 = vmatmul.bf16.gmra.mxu1 %v1373_v55 }
  0xa1   : > { %421 = vmatmul.bf16.gmra.mxu0 %v1356_v27 }
  0xcc   : > { %v600_v2 = vpop.f32.mrf.mxu1 }
  0xce   : > { %v397_v36 = vpop.f32.mrf.mxu0 }
  0xd4   : > { %v427_v37 = vpop.f32.mrf.mxu3  ;;  %v602_v4 = vpop.f32.mrf.mxu1 }
  0xd6   : > { %v399_v39 = vpop.f32.mrf.mxu0 }
  0xd7   : > { %v455_v40 = vpack.c.bf16 %v399_v39, %v397_v36 }
  0xd9   : > { %696 = vmatmul.bf16.vlgmr.msra.gmra.mxu2 %v455_v40 }
  0xdc   : > { %v429_v41 = vpop.f32.mrf.mxu3  ;;  %v605_v6 = vpop.f32.mrf.mxu1 }
  0xdd   : > { %v461_v42 = vpack.c.bf16 %v429_v41, %v427_v37 }
  0xde   : > { %v402_v43 = vpop.f32.mrf.mxu0 }
  0xdf   : > { %726 = vmatmul.bf16.vlgmr.msra.gmra.mxu3 %v461_v42 }
  0xe4   : > { %v432_v44 = vpop.f32.mrf.mxu3  ;;  %v607_v15 = vpop.f32.mrf.mxu1 }
  0xe6   : > { %v404_v46 = vpop.f32.mrf.mxu0 }
  0xe7   : > { %v456_v47 = vpack.c.bf16 %v404_v46, %v402_v43 }
  0xe9   : > { %701 = vmatmul.bf16.gmra.mxu2 %v456_v47 }
  0xec   : > { %v434_v48 = vpop.f32.mrf.mxu3  ;;  %v610_v26 = vpop.f32.mrf.mxu1 }
  0xed   : > { %v462_v49 = vpack.c.bf16 %v434_v48, %v432_v44 }
  0xee   : > { %v407_v50 = vpop.f32.mrf.mxu0 }
  0xef   : > { %731 = vmatmul.bf16.gmra.mxu3 %v462_v49 }
  0xf4   : > { %v630_v0 = vpop.f32.mrf.mxu3  ;;  %v612_v37 = vpop.f32.mrf.mxu1 }
  0xf6   : > { %v409_v52 = vpop.f32.mrf.mxu0 }
  0xf7   : > { %v457_v53 = vpack.c.bf16 %v409_v52, %v407_v50 }
  0xf9   : > { %706 = vmatmul.bf16.gmra.mxu2 %v457_v53 }
  0xfc   : > { %v632_v1 = vpop.f32.mrf.mxu3  ;;  %v615_v47 = vpop.f32.mrf.mxu1 }
  0xfe   : > { %v412_v54 = vpop.f32.mrf.mxu0 }
 0x104   : > { %v635_v3 = vpop.f32.mrf.mxu3  ;;  %v617_v52 = vpop.f32.mrf.mxu1 }
 0x106   : > { %v414_v56 = vpop.f32.mrf.mxu0 }
 0x107   : > { %v458_v57 = vpack.c.bf16 %v414_v56, %v412_v54 }
 0x109   : > { %711 = vmatmul.bf16.gmra.mxu2 %v458_v57 }
 0x10c   : > { %v637_v5 = vpop.f32.mrf.mxu3 }
 0x10e   : > { %v417_v58 = vpop.f32.mrf.mxu0 }
 0x116   : > { %v419_v59 = vpop.f32.mrf.mxu0 }
 0x117   : > { %v459_v60 = vpack.c.bf16 %v419_v59, %v417_v58  ;;  %v620_v59 = vpop.f32.mrf.mxu1 }
 0x119   : > { %716 = vmatmul.bf16.gmra.mxu2 %v459_v60 }
 0x11e   : > { %v422_v61 = vpop.f32.mrf.mxu0 }
 0x126   : > { %v424_v62 = vpop.f32.mrf.mxu0 }
 0x127   : > { %v460_v63 = vpack.c.bf16 %v424_v62, %v422_v61 }
 0x129   : > { %721 = vmatmul.bf16.gmra.mxu2 %v460_v63 }
 0x15c   : > { %v697_v8 = vpop.f32.mrf.mxu2 }
 0x15d   : > { %v698_v9 = vadd.f32 %v697_v8, %v600_v2 }
 0x15f   : > { %v2060_v10 = vadd.f32 %v2057_v7, %v698_v9 }
 0x161   : > { %v757_v11 = vmax.f32 %v2060_v10, 0.0 }
 0x162   : > { %v727_v12 = vpop.f32.mrf.mxu3 }
 0x163   : > { %v728_v13 = vadd.f32 %v727_v12, %v630_v0 }
 0x164   : > { %v699_v14 = vpop.f32.mrf.mxu2 }
 0x165   : > { %v700_v16 = vadd.f32 %v699_v14, %v602_v4  ;;  %v2064_v17 = vadd.f32 %v2057_v7, %v728_v13 }
 0x167   : > { %v2067_v18 = vadd.f32 %v2057_v7, %v700_v16  ;;  %v769_v19 = vmax.f32 %v2064_v17, 0.0 }
 0x169   : > { %v758_v20 = vmax.f32 %v2067_v18, 0.0 }
 0x16a   : > { %v729_v21 = vpop.f32.mrf.mxu3 }
 0x16b   : > { %v730_v22 = vadd.f32 %v729_v21, %v632_v1  ;;  %v622_v1 = vpop.f32.mrf.mxu1 }
 0x16c   : > { %v702_v23 = vpop.f32.mrf.mxu2 }
 0x16d   : > { %v703_v24 = vadd.f32 %v702_v23, %v605_v6  ;;  %v2072_v25 = vadd.f32 %v2057_v7, %v730_v22 }
 0x16f   : > { %v2075_v27 = vadd.f32 %v2057_v7, %v703_v24  ;;  %v770_v28 = vmax.f32 %v2072_v25, 0.0 }
 0x171   : > { %v759_v29 = vmax.f32 %v2075_v27, 0.0 }
 0x172   : > { %v732_v30 = vpop.f32.mrf.mxu3 }
 0x173   : > { %v733_v31 = vadd.f32 %v732_v30, %v635_v3  ;;  %v625_v8 = vpop.f32.mrf.mxu1 }
 0x174   : > { %v704_v32 = vpop.f32.mrf.mxu2 }
 0x175   : > { %v705_v33 = vadd.f32 %v704_v32, %v607_v15  ;;  %v2080_v34 = vadd.f32 %v2057_v7, %v733_v31 }
 0x177   : > { %v2083_v35 = vadd.f32 %v2057_v7, %v705_v33  ;;  %v771_v36 = vmax.f32 %v2080_v34, 0.0 }
 0x179   : > { %v760_v38 = vmax.f32 %v2083_v35, 0.0 }
 0x17a   : > { %v734_v39 = vpop.f32.mrf.mxu3 }
 0x17b   : > { %v735_v40 = vadd.f32 %v734_v39, %v637_v5  ;;  %v627_v15 = vpop.f32.mrf.mxu1 }
 0x17c   : > { %v707_v41 = vpop.f32.mrf.mxu2 }
 0x17d   : > { %v708_v42 = vadd.f32 %v707_v41, %v610_v26  ;;  %v2088_v43 = vadd.f32 %v2057_v7, %v735_v40 }
 0x17f   : > { %v2091_v44 = vadd.f32 %v2057_v7, %v708_v42  ;;  %v772_v45 = vmax.f32 %v2088_v43, 0.0 }
 0x181   : > { %v761_v46 = vmax.f32 %v2091_v44, 0.0 }
 0x184   : > { %v709_v48 = vpop.f32.mrf.mxu2 }
 0x185   : > { %v710_v49 = vadd.f32 %v709_v48, %v612_v37 }
 0x187   : > { %v2096_v50 = vadd.f32 %v2057_v7, %v710_v49 }
 0x189   : > { %v762_v51 = vmax.f32 %v2096_v50, 0.0 }
 0x18c   : > { %v712_v53 = vpop.f32.mrf.mxu2 }
 0x18d   : > { %v713_v54 = vadd.f32 %v712_v53, %v615_v47 }
 0x18f   : > { %v2100_v55 = vadd.f32 %v2057_v7, %v713_v54 }
 0x191   : > { %v763_v56 = vmax.f32 %v2100_v55, 0.0 }
 0x194   : > { %v714_v57 = vpop.f32.mrf.mxu2 }
 0x195   : > { %v715_v58 = vadd.f32 %v714_v57, %v617_v52 }
 0x197   : > { %v2104_v60 = vadd.f32 %v2057_v7, %v715_v58 }
 0x199   : > { %v764_v61 = vmax.f32 %v2104_v60, 0.0 }
 0x19c   : > { %v717_v62 = vpop.f32.mrf.mxu2 }
 0x19d   : > { %v718_v63 = vadd.f32 %v717_v62, %v620_v59 }
 0x19f   : > { %v2108_v0 = vadd.f32 %v2057_v7, %v718_v63 }
 0x1a1   : > { %v765_v2 = vmax.f32 %v2108_v0, 0.0 }
 0x1a4   : > { %v719_v3 = vpop.f32.mrf.mxu2 }
 0x1a5   : > { %v720_v4 = vadd.f32 %v719_v3, %v622_v1 }
 0x1a7   : > { %v2112_v5 = vadd.f32 %v2057_v7, %v720_v4 }
 0x1a9   : > { %v766_v6 = vmax.f32 %v2112_v5, 0.0 }
 0x1ac   : > { %v722_v9 = vpop.f32.mrf.mxu2 }
 0x1ad   : > { %v723_v12 = vadd.f32 %v722_v9, %v625_v8 }
 0x1af   : > { %v2116_v13 = vadd.f32 %v2057_v7, %v723_v12 }
 0x1b1   : > { %v767_v14 = vmax.f32 %v2116_v13, 0.0 }
 0x1b4   : > { %v724_v16 = vpop.f32.mrf.mxu2 }
 0x1b5   : > { %v725_v21 = vadd.f32 %v724_v16, %v627_v15  ;;  %794 = sbr.rel (%p2020_p3) target bundleno = 452 (0x1c4), region = 52 }
 0x1b7   : > { %v2120_v22 = vadd.f32 %v2057_v7, %v725_v21 }
 0x1b9   : > { %v768_v23 = vmax.f32 %v2120_v22, 0.0 }
 0x1ba   : > { %v1395_v24 = vpack.c.bf16 %v758_v20, %v757_v11  ;;  %v1400_v26 = vpack.c.bf16 %v760_v38, %v759_v29  ;;  %v1405_v30 = vpack.c.bf16 %v762_v51, %v761_v46  ;;  %v1410_v31 = vpack.c.bf16 %v764_v61, %v763_v56 }
 0x1bb   : > { %v1415_v7 = vpack.c.bf16 %v766_v6, %v765_v2  ;;  %v1420_v32 = vpack.c.bf16 %v768_v23, %v767_v14  ;;  %v1425_v33 = vpack.c.bf16 %v770_v28, %v769_v19  ;;  %v1430_v37 = vpack.c.bf16 %v772_v45, %v771_v36 }
 0x1bc   : > { %1472 = vst [vmem:[#allocation3 + $0x40] sm:$0xff] %v1395_v24  }
 0x1bd   : > { %1473 = vst [vmem:[#allocation3 + $0x48] sm:$0xff] %v1400_v26  }
 0x1be   : > { %1474 = vst [vmem:[#allocation3 + $0x50] sm:$0xff] %v1405_v30  }
 0x1bf   : > { %1475 = vst [vmem:[#allocation3 + $0x58] sm:$0xff] %v1410_v31  }
 0x1c0   : > { %1476 = vst [vmem:[#allocation3 + $0x60] sm:$0xff] %v1415_v7  }
 0x1c1   : > { %1477 = vst [vmem:[#allocation3 + $0x68] sm:$0xff] %v1420_v32  }
 0x1c2   : > { %1478 = vst [vmem:[#allocation3 + $0x70] sm:$0xff] %v1425_v33  }
 0x1c3   : > { %1479 = vst [vmem:[#allocation3 + $0x78] sm:$0xff] %v1430_v37  }
 0x1c4 PF: > { %p814_p4 = scmp.eq.s32.totalorder %s2317_s8, 1 }
 0x1c6   : > { %p815_p5 = pnand %p814_p4, %p789_p1 }
 0x1c8   : > { %818 = sbr.rel (%p815_p5) target bundleno = 471 (0x1d7), region = 56 }
 0x1cd   : > { %v1435_v39 = vpack.c.bf16 %v758_v20, %v757_v11  ;;  %v1440_v40 = vpack.c.bf16 %v760_v38, %v759_v29  ;;  %v1445_v41 = vpack.c.bf16 %v762_v51, %v761_v46  ;;  %v1450_v42 = vpack.c.bf16 %v764_v61, %v763_v56 }
 0x1ce   : > { %v1455_v47 = vpack.c.bf16 %v766_v6, %v765_v2  ;;  %v1460_v48 = vpack.c.bf16 %v768_v23, %v767_v14  ;;  %v1465_v49 = vpack.c.bf16 %v770_v28, %v769_v19  ;;  %v1470_v11 = vpack.c.bf16 %v772_v45, %v771_v36 }
 0x1cf   : > { %1436 = vst [vmem:[#allocation3] sm:$0xff] %v1435_v39  }
 0x1d0   : > { %1480 = vst [vmem:[#allocation3 + $0x8] sm:$0xff] %v1440_v40  }
 0x1d1   : > { %1481 = vst [vmem:[#allocation3 + $0x10] sm:$0xff] %v1445_v41  }
 0x1d2   : > { %1482 = vst [vmem:[#allocation3 + $0x18] sm:$0xff] %v1450_v42  }
 0x1d3   : > { %1483 = vst [vmem:[#allocation3 + $0x20] sm:$0xff] %v1455_v47  }
 0x1d4   : > { %1484 = vst [vmem:[#allocation3 + $0x28] sm:$0xff] %v1460_v48  }
 0x1d5   : > { %1485 = vst [vmem:[#allocation3 + $0x30] sm:$0xff] %v1465_v49  }
 0x1d6   : > { %1486 = vst [vmem:[#allocation3 + $0x38] sm:$0xff] %v1470_v11  }
 0x1d7 PF: > { %p1342_p6 = scmp.ne.s32.totalorder %s1855_s18, 2 }
 0x1d9   : > { %840 = sbr.rel (%p1342_p6) target bundleno = 782 (0x30e), region = 60 }
 0x1de   : > { %v841_v20 = vlaneseq }
 0x1e0   : > { %v842_v29 = vand.u32 127, %v841_v20 }
 0x1e2   : > { %vm843_vm0 = vcmp.lt.s32.totalorder %v842_v29, 16 }
 0x1e3   : > { %v848_v19 = vsel %vm843_vm0, %v2091_v44, -1e+30  ;;  %v846_v28 = vsel %vm843_vm0, %v2075_v27, -1e+30  ;;  %v844_v36 = vsel %vm843_vm0, %v2060_v10, -1e+30 }
 0x1e4   : > { %868 = vmax.xlane.f32.xlu2 %v848_v19  ;;  %864 = vmax.xlane.f32.xlu1 %v846_v28  ;;  %v849_v38 = vsel %vm843_vm0, %v2096_v50, -1e+30  ;;  %v847_v45 = vsel %vm843_vm0, %v2083_v35, -1e+30  ;;  %v845_v46 = vsel %vm843_vm0, %v2067_v18, -1e+30 }
 0x1e5   : > { %860 = vmax.xlane.f32.xlu0 %v844_v36  ;;  %v852_v27 = vsel %vm843_vm0, %v2108_v0, -1e+30  ;;  %v851_v10 = vsel %vm843_vm0, %v2104_v60, -1e+30  ;;  %v850_v44 = vsel %vm843_vm0, %v2100_v55, -1e+30 }
 0x1e6   : > { %v855_v35 = vsel %vm843_vm0, %v2120_v22, -1e+30  ;;  %v2183_v18 = vsel %vm843_vm0, %v2116_v13, -1e+30  ;;  %v853_v50 = vsel %vm843_vm0, %v2112_v5, -1e+30 }
 0x1e7   : > { %v2190_v51 = vsel %vm843_vm0, %v2080_v34, -1e+30  ;;  %v2194_v52 = vsel %vm843_vm0, %v2072_v25, -1e+30  ;;  %v2198_v53 = vsel %vm843_vm0, %v2064_v17, -1e+30 }
 0x1e8   : > { %v2205_v54 = vsel %vm843_vm0, %v2088_v43, -1e+30 }
 0x1ec   : > { %870 = vmax.xlane.f32.xlu2 %v849_v38  ;;  %866 = vmax.xlane.f32.xlu1 %v847_v45 }
 0x1ed   : > { %862 = vmax.xlane.f32.xlu0 %v845_v46 }
 0x1f4   : > { %876 = vmax.xlane.f32.xlu2 %v852_v27  ;;  %874 = vmax.xlane.f32.xlu1 %v851_v10 }
 0x1f5   : > { %872 = vmax.xlane.f32.xlu0 %v850_v44 }
 0x1fc   : > { %882 = vmax.xlane.f32.xlu2 %v855_v35  ;;  %880 = vmax.xlane.f32.xlu1 %v2183_v18 }
 0x1fd   : > { %878 = vmax.xlane.f32.xlu0 %v853_v50 }
 0x204   : > { %888 = vmax.xlane.f32.xlu2 %v2190_v51  ;;  %886 = vmax.xlane.f32.xlu1 %v2194_v52 }
 0x205   : > { %884 = vmax.xlane.f32.xlu0 %v2198_v53 }
 0x20d   : > { %890 = vmax.xlane.f32.xlu0 %v2205_v54 }
 0x257   : > { %v869_v34 = vpop.xlane.xlu2 %868  ;;  %v865_v55 = vpop.xlane.xlu1 %864 }
 0x258   : > { %v2208_v25 = vsub.f32 %v846_v28, %v865_v55  ;;  %v861_v56 = vpop.xlane.xlu0 %860  ;;  %v2223_v5 = vsub.f32 %v848_v19, %v869_v34 }
 0x259   : > { %v2210_v57 = vsub.f32 %v844_v36, %v861_v56 }
 0x25a   : > { %v912_v17 = vmul.f32 1.442695, %v2208_v25  ;;  %v916_v15 = vmul.f32 1.442695, %v2223_v5 }
 0x25b   : > { %v908_v58 = vmul.f32 1.442695, %v2210_v57 }
 0x25c   : > { %1589 = vpow2.f32 %v912_v17 }
 0x25d   : > { %1591 = vpow2.f32 %v908_v58 }
 0x25f   : > { %v871_v59 = vpop.xlane.xlu2 %870  ;;  %v867_v60 = vpop.xlane.xlu1 %866 }
 0x260   : > { %v2214_v61 = vsub.f32 %v849_v38, %v871_v59  ;;  %v2216_v43 = vsub.f32 %v847_v45, %v867_v60  ;;  %v863_v62 = vpop.xlane.xlu0 %862 }
 0x261   : > { %v2218_v63 = vsub.f32 %v845_v46, %v863_v62 }
 0x262   : > { %v918_v0 = vmul.f32 1.442695, %v2214_v61  ;;  %v914_v1 = vmul.f32 1.442695, %v2216_v43  ;;  %v1590_v2 = vpop.eup %1589 }
 0x263   : > { %v910_v3 = vmul.f32 1.442695, %v2218_v63  ;;  %v1592_v4 = vpop.eup %1591  ;;  %944 = vadd.xlane.f32.xlu0 %v1590_v2 }
 0x264   : > { %1593 = vpow2.f32 %v918_v0  ;;  %940 = vadd.xlane.f32.xlu1 %v1592_v4 }
 0x265   : > { %1595 = vpow2.f32 %v914_v1 }
 0x266   : > { %1597 = vpow2.f32 %v910_v3 }
 0x267   : > { %v877_v6 = vpop.xlane.xlu2 %876  ;;  %v875_v8 = vpop.xlane.xlu1 %874 }
 0x268   : > { %v2225_v9 = vsub.f32 %v852_v27, %v877_v6  ;;  %v873_v12 = vpop.xlane.xlu0 %872  ;;  %v2232_v23 = vsub.f32 %v851_v10, %v875_v8 }
 0x269   : > { %v2227_v13 = vsub.f32 %v850_v44, %v873_v12 }
 0x26a   : > { %v1594_v14 = vpop.eup %1593  ;;  %v924_v16 = vmul.f32 1.442695, %v2225_v9  ;;  %v922_v30 = vmul.f32 1.442695, %v2232_v23 }
 0x26b   : > { %v1596_v21 = vpop.eup %1595  ;;  %v920_v22 = vmul.f32 1.442695, %v2227_v13  ;;  %950 = vadd.xlane.f32.xlu0 %v1594_v14 }
 0x26c   : > { %v1598_v24 = vpop.eup %1597  ;;  %1599 = vpow2.f32 %v924_v16  ;;  %946 = vadd.xlane.f32.xlu1 %v1596_v21 }
 0x26d   : > { %1601 = vpow2.f32 %v920_v22  ;;  %942 = vadd.xlane.f32.xlu2 %v1598_v24 }
 0x26e   : > { %1603 = vpow2.f32 %v916_v15 }
 0x26f   : > { %v883_v26 = vpop.xlane.xlu2 %882  ;;  %v881_v31 = vpop.xlane.xlu1 %880  ;;  %1605 = vpow2.f32 %v922_v30 }
 0x270   : > { %v2235_v7 = vsub.f32 %v855_v35, %v883_v26  ;;  %v879_v32 = vpop.xlane.xlu0 %878  ;;  %v2242_v42 = vsub.f32 %v2183_v18, %v881_v31 }
 0x271   : > { %v2237_v33 = vsub.f32 %v853_v50, %v879_v32 }
 0x272   : > { %v1600_v37 = vpop.eup %1599  ;;  %v930_v39 = vmul.f32 1.442695, %v2235_v7  ;;  %v928_v49 = vmul.f32 1.442695, %v2242_v42 }
 0x273   : > { %v1602_v40 = vpop.eup %1601  ;;  %v926_v41 = vmul.f32 1.442695, %v2237_v33  ;;  %956 = vadd.xlane.f32.xlu0 %v1600_v37 }
 0x274   : > { %v1604_v47 = vpop.eup %1603  ;;  %1607 = vpow2.f32 %v930_v39  ;;  %952 = vadd.xlane.f32.xlu1 %v1602_v40 }
 0x275   : > { %1609 = vpow2.f32 %v926_v41  ;;  %948 = vadd.xlane.f32.xlu2 %v1604_v47  ;;  %v1606_v29 = vpop.eup %1605 }
 0x276   : > { %1611 = vpow2.f32 %v928_v49 }
 0x277   : > { %v889_v48 = vpop.xlane.xlu2 %888  ;;  %v887_v28 = vpop.xlane.xlu1 %886 }
 0x278   : > { %v2246_v11 = vsub.f32 %v2190_v51, %v889_v48  ;;  %v885_v20 = vpop.xlane.xlu0 %884  ;;  %v2254_v27 = vsub.f32 %v2194_v52, %v887_v28 }
 0x279   : > { %v2249_v19 = vsub.f32 %v2198_v53, %v885_v20 }
 0x27a   : > { %v1608_v36 = vpop.eup %1607  ;;  %v936_v38 = vmul.f32 1.442695, %v2246_v11  ;;  %v934_v10 = vmul.f32 1.442695, %v2254_v27 }
 0x27b   : > { %v1610_v45 = vpop.eup %1609  ;;  %v932_v46 = vmul.f32 1.442695, %v2249_v19  ;;  %962 = vadd.xlane.f32.xlu0 %v1608_v36 }
 0x27c   : > { %1613 = vpow2.f32 %v936_v38  ;;  %958 = vadd.xlane.f32.xlu1 %v1610_v45  ;;  %v1612_v35 = vpop.eup %1611 }
 0x27d   : > { %1615 = vpow2.f32 %v932_v46  ;;  %954 = vadd.xlane.f32.xlu2 %v1606_v29 }
 0x27e   : > { %1617 = vpow2.f32 %v934_v10 }
 0x280   : > { %v891_v44 = vpop.xlane.xlu0 %890 }
 0x281   : > { %v2258_v18 = vsub.f32 %v2205_v54, %v891_v44 }
 0x282   : > { %v1614_v50 = vpop.eup %1613 }
 0x283   : > { %v1616_v51 = vpop.eup %1615  ;;  %v938_v53 = vmul.f32 1.442695, %v2258_v18  ;;  %968 = vadd.xlane.f32.xlu0 %v1614_v50 }
 0x284   : > { %964 = vadd.xlane.f32.xlu1 %v1616_v51  ;;  %v1618_v52 = vpop.eup %1617 }
 0x285   : > { %1619 = vpow2.f32 %v938_v53  ;;  %960 = vadd.xlane.f32.xlu2 %v1612_v35 }
 0x28b   : > { %v1620_v34 = vpop.eup %1619 }
 0x28c   : > { %970 = vadd.xlane.f32.xlu1 %v1620_v34 }
 0x28d   : > { %966 = vadd.xlane.f32.xlu2 %v1618_v52 }
 0x2d6   : > { %v945_v55 = vpop.xlane.xlu0 %944 }
 0x2d7   : > { %v941_v56 = vpop.xlane.xlu1 %940  ;;  %1621 = vlog2.f32 %v945_v55 }
 0x2d8   : > { %1623 = vlog2.f32 %v941_v56 }
 0x2dd   : > { %v1622_v17 = vpop.eup %1621 }
 0x2de   : > { %v1624_v54 = vpop.eup %1623  ;;  %v977_v58 = vmul.f32 0.6931472, %v1622_v17  ;;  %v951_v59 = vpop.xlane.xlu0 %950 }
 0x2df   : > { %v973_v60 = vmul.f32 0.6931472, %v1624_v54  ;;  %v947_v62 = vpop.xlane.xlu1 %946  ;;  %1625 = vlog2.f32 %v951_v59 }
 0x2e0   : > { %v943_v0 = vpop.xlane.xlu2 %942  ;;  %v1006_v1 = vsub.f32 %v2208_v25, %v977_v58  ;;  %1627 = vlog2.f32 %v947_v62 }
 0x2e1   : > { %v1004_v2 = vsub.f32 %v2210_v57, %v973_v60  ;;  %1629 = vlog2.f32 %v943_v0 }
 0x2e2   : > { %1022 = vst [vmem:[#allocation10 + $0x10] sm:$0xff] %v1006_v1 }
 0x2e3   : > { %1020 = vst [vmem:[#allocation10] sm:$0xff] %v1004_v2 }
 0x2e5   : > { %v1626_v3 = vpop.eup %1625 }
 0x2e6   : > { %v1628_v4 = vpop.eup %1627  ;;  %v983_v6 = vmul.f32 0.6931472, %v1626_v3  ;;  %v957_v8 = vpop.xlane.xlu0 %956 }
 0x2e7   : > { %v1630_v12 = vpop.eup %1629  ;;  %v979_v14 = vmul.f32 0.6931472, %v1628_v4  ;;  %v953_v16 = vpop.xlane.xlu1 %952  ;;  %1631 = vlog2.f32 %v957_v8 }
 0x2e8   : > { %v949_v15 = vpop.xlane.xlu2 %948  ;;  %v975_v21 = vmul.f32 0.6931472, %v1630_v12  ;;  %v1009_v22 = vsub.f32 %v2214_v61, %v983_v6 }
 0x2e9   : > { %1633 = vlog2.f32 %v949_v15  ;;  %v1007_v25 = vsub.f32 %v2216_v43, %v979_v14 }
 0x2ea   : > { %1635 = vlog2.f32 %v953_v16  ;;  %v1005_v57 = vsub.f32 %v2218_v63, %v975_v21  ;;  %1025 = vst [vmem:[#allocation10 + $0x28] sm:$0xff] %v1009_v22 }
 0x2eb   : > { %1023 = vst [vmem:[#allocation10 + $0x18] sm:$0xff] %v1007_v25 }
 0x2ec   : > { %1021 = vst [vmem:[#allocation10 + $0x8] sm:$0xff] %v1005_v57 }
 0x2ed   : > { %v1632_v24 = vpop.eup %1631 }
 0x2ee   : > { %v989_v30 = vmul.f32 0.6931472, %v1632_v24  ;;  %v963_v31 = vpop.xlane.xlu0 %962 }
 0x2ef   : > { %v1634_v26 = vpop.eup %1633  ;;  %v959_v40 = vpop.xlane.xlu1 %958  ;;  %1637 = vlog2.f32 %v963_v31 }
 0x2f0   : > { %v1636_v32 = vpop.eup %1635  ;;  %v981_v37 = vmul.f32 0.6931472, %v1634_v26  ;;  %v955_v39 = vpop.xlane.xlu2 %954  ;;  %v1012_v61 = vsub.f32 %v2225_v9, %v989_v30 }
 0x2f1   : > { %v985_v41 = vmul.f32 0.6931472, %v1636_v32  ;;  %1639 = vlog2.f32 %v955_v39 }
 0x2f2   : > { %v1008_v43 = vsub.f32 %v2223_v5, %v981_v37  ;;  %1641 = vlog2.f32 %v959_v40  ;;  %1028 = vst [vmem:[#allocation10 + $0x40] sm:$0xff] %v1012_v61 }
 0x2f3   : > { %v1010_v63 = vsub.f32 %v2227_v13, %v985_v41 }
 0x2f4   : > { %1024 = vst [vmem:[#allocation10 + $0x20] sm:$0xff] %v1008_v43 }
 0x2f5   : > { %1026 = vst [vmem:[#allocation10 + $0x30] sm:$0xff] %v1010_v63  ;;  %v1638_v47 = vpop.eup %1637 }
 0x2f6   : > { %v995_v49 = vmul.f32 0.6931472, %v1638_v47  ;;  %v969_v20 = vpop.xlane.xlu0 %968 }
 0x2f7   : > { %v1640_v48 = vpop.eup %1639  ;;  %v965_v38 = vpop.xlane.xlu1 %964  ;;  %1643 = vlog2.f32 %v969_v20 }
 0x2f8   : > { %v1642_v29 = vpop.eup %1641  ;;  %v987_v28 = vmul.f32 0.6931472, %v1640_v48  ;;  %v961_v36 = vpop.xlane.xlu2 %960  ;;  %v1015_v9 = vsub.f32 %v2235_v7, %v995_v49 }
 0x2f9   : > { %v991_v45 = vmul.f32 0.6931472, %v1642_v29  ;;  %1645 = vlog2.f32 %v961_v36 }
 0x2fa   : > { %v1011_v5 = vsub.f32 %v2232_v23, %v987_v28  ;;  %1647 = vlog2.f32 %v965_v38  ;;  %1031 = vst [vmem:[#allocation10 + $0x58] sm:$0xff] %v1015_v9 }
 0x2fb   : > { %v1013_v13 = vsub.f32 %v2237_v33, %v991_v45 }
 0x2fc   : > { %1027 = vst [vmem:[#allocation10 + $0x38] sm:$0xff] %v1011_v5 }
 0x2fd   : > { %1029 = vst [vmem:[#allocation10 + $0x48] sm:$0xff] %v1013_v13  ;;  %v1644_v46 = vpop.eup %1643 }
 0x2fe   : > { %v1001_v44 = vmul.f32 0.6931472, %v1644_v46 }
 0x2ff   : > { %v1646_v10 = vpop.eup %1645  ;;  %v971_v53 = vpop.xlane.xlu1 %970 }
 0x300   : > { %v1648_v35 = vpop.eup %1647  ;;  %v993_v50 = vmul.f32 0.6931472, %v1646_v10  ;;  %v967_v51 = vpop.xlane.xlu2 %966  ;;  %v1018_v34 = vsub.f32 %v2246_v11, %v1001_v44 }
 0x301   : > { %v997_v52 = vmul.f32 0.6931472, %v1648_v35  ;;  %1649 = vlog2.f32 %v967_v51 }
 0x302   : > { %v1014_v7 = vsub.f32 %v2242_v42, %v993_v50  ;;  %1651 = vlog2.f32 %v971_v53  ;;  %1034 = vst [vmem:[#allocation10 + $0x70] sm:$0xff] %v1018_v34 }
 0x303   : > { %v1016_v23 = vsub.f32 %v2249_v19, %v997_v52 }
 0x304   : > { %1030 = vst [vmem:[#allocation10 + $0x50] sm:$0xff] %v1014_v7 }
 0x305   : > { %1032 = vst [vmem:[#allocation10 + $0x60] sm:$0xff] %v1016_v23 }
 0x307   : > { %v1650_v33 = vpop.eup %1649 }
 0x308   : > { %v1652_v55 = vpop.eup %1651  ;;  %v999_v56 = vmul.f32 0.6931472, %v1650_v33 }
 0x309   : > { %v1003_v17 = vmul.f32 0.6931472, %v1652_v55 }
 0x30a   : > { %v1017_v54 = vsub.f32 %v2254_v27, %v999_v56 }
 0x30b   : > { %v1019_v58 = vsub.f32 %v2258_v18, %v1003_v17 }
 0x30c   : > { %1033 = vst [vmem:[#allocation10 + $0x68] sm:$0xff] %v1017_v54 }
 0x30d   : > { %1035 = vst [vmem:[#allocation10 + $0x78] sm:$0xff] %v1019_v58 }
 0x30e PF: > { %p1531_p7 = scmp.eq.s32.totalorder %s1154_s21, 2  ;;  %s1046_s9 = sshll.u32 %s2304_s4, 4  ;;  %s1047_s9 = int_to_ptr.hbm [resolvable:$true] %s1046_s9 }
 0x30f   : > { %s1869_s10 = smov [#allocation10]   ;;  %s1870_s14 = smov 128  }
 0x310   : > { %s1044_s13 = sshll.u32 %s1869_s10, 4  ;;  %s1871_s15 = smov 8   ;;  %s1045_s13 = int_to_ptr.vmem [resolvable:$true] %s1044_s13 }
 0x311   : > { %1520 = dma.vmem_to_hbm [thread:$0]  (%p1531_p7), %s1045_s13, 2048, %s1047_s9, [#allocation7], %s1870_s14, %s1870_s14, %s1871_s15  }
 0x312   : > { %1838 = dma.done.wait (%p1531_p7), [#allocation7], 2048  }
 0x313   : > { %1840 = vsyncadd (%p1531_p7), [#allocation7], 4294965248 }
 0x314 PF: > { %s21_s20 = sadd.s32 1, %s1863_s20   ;;  %s2309_s15 = smov %s1847_s16 }
 0x315   : > { %p18_p8 = scmp.ge.s32.totalorder %s21_s20, 5   ;;  %s2310_s16 = smov %s1851_s17 }
 0x316   : > { %s2311_s17 = smov %s1948_s27  ;;  %s2312_s18 = smov %s1859_s19 }
 0x317   : > { %s2313_s19 = smov %s2315_s22  ;;  %20 = sbr.rel (!%p18_p8) target bundleno = 7 (0x7), region = 110 }
 0x31c   :  { %1063 = vsyncpa [#allocation6], 1 }
 0x31d   :  { %1065 = vsyncpa [#allocation6 + $0x1], 1 }
 0x31e   :  { %1066 = vsyncpa [#allocation9], 1 }
 0x31f   :  { %1068 = vsyncpa [#allocation9 + $0x1], 1 }
 0x320   :  { %1069 = vsyncpa [#allocation7], 1 }
 0x321   :  { %1071 = vsyncpa [#allocation7 + $0x1], 1 }
 0x322   :  { %1072 = vsyncmov [#allocation4] }
 0x325   :  { %s1073_s21 = vpop.sfrf %1072 }
 0x326   :  { %p1347_p9 = scmp.ne.s32.totalorder %s1073_s21, 0 }
 0x328   :  { %1077 = shalt.err (%p1347_p9)  }
 0x329   :  { %1079 = vsyncmov [#allocation4 + $0x1] }
 0x32c   :  { %s1080_s23 = vpop.sfrf %1079 }
 0x32d   :  { %p1348_p10 = scmp.ne.s32.totalorder %s1080_s23, 0 }
 0x32f   :  { %1084 = shalt.err (%p1348_p10)  }

</bundles_post_ra>
